<compile_context>
chip_gen: v6e
topology: v6e:2x2x1
jax: 0.10.0
libtpu: 0.0.40
codegen_flags: <defaults>
</compile_context>

<pallas_src>
import jax
import jax.numpy as jnp
from jax.experimental import pallas as pl
from jax.experimental.pallas import tpu as pltpu


def _round_up(n, m):
    return ((n + m - 1) // m) * m


def actor_kernel(x_ref, w1_ref, b1_ref, w2_ref, b2_ref, w3_ref, b3_ref,
                 mean_ref):
    # Layer 1: Linear(obs_dim -> 64) + tanh   (MXU matmul, EUP tanh, f32 throughout)
    h1 = jnp.tanh(
        jnp.dot(x_ref[...], w1_ref[...], preferred_element_type=jnp.float32)
        + b1_ref[...]
    )
    # Layer 2: Linear(64 -> 64) + tanh
    h2 = jnp.tanh(
        jnp.dot(h1, w2_ref[...], preferred_element_type=jnp.float32)
        + b2_ref[...]
    )
    # Policy mean head: Linear(64 -> act_dim)
    mean_ref[...] = (
        jnp.dot(h2, w3_ref[...], preferred_element_type=jnp.float32)
        + b3_ref[...]
    )


def actor_forward(x, params, *, tile_b=4096, broadcast_std=True):
    """Fused Actor forward.

    x: [B, obs_dim] float32
    params: dict with w1,b1,w2,b2,w3,b3 ([in,out] weights, [1,out] biases) and
            log_std ([1, act_dim]).
    Returns (mean [B, act_dim], std). std is [B, act_dim] if broadcast_std
    (module semantics) else [1, act_dim] (halves output HBM traffic).
    """
    B, obs_dim = x.shape
    hidden = params["w1"].shape[1]
    act_dim = params["w3"].shape[1]

    # --- Batch tile selection -------------------------------------------------
    # Multiple of 8 (sublane), as large as possible (DMA/step-overhead bound),
    # capped at 8192 so the lane-padded footprint stays well inside every
    # generation's VMEM budget.
    tb = _round_up(min(tile_b, 8192, _round_up(B, 8)), 8)
    # Keep >=2 grid steps when the batch allows it, so the "parallel" axis can
    # be split across v7x's two TensorCores (and DMA/compute can overlap).
    if B > 8 and pl.cdiv(B, tb) < 2:
        tb = max(8, _round_up(pl.cdiv(B, 2), 8))
    grid = (pl.cdiv(B, tb),)

    # --- Scoped-VMEM budget ---------------------------------------------------
    # obs_dim/act_dim lane-pad to 128 in VMEM -> each tile row costs 512 B per
    # buffer. x & mean tiles are double-buffered; h1/h2 intermediates are
    # single-buffered; weights + misc get a flat 1 MiB; plus compiler headroom.
    per_step_bytes = (
        2 * 2 * tb * 128 * 4     # x + mean tiles, double-buffered
        + 2 * tb * 128 * 4       # h1 / h2 intermediates
        + (1 << 20)              # weights, biases, misc
    )
    vmem_limit = int(min(max(per_step_bytes + (8 << 20), 32 << 20), 64 << 20))

    # --- Advisory cost estimate (lets XLA overlap neighbors with this call) ---
    flops = 2 * B * (obs_dim * hidden + hidden * hidden + hidden * act_dim)
    transcendentals = 2 * B * hidden
    bytes_accessed = 4 * (
        B * obs_dim + B * act_dim
        + obs_dim * hidden + hidden
        + hidden * hidden + hidden
        + hidden * act_dim + act_dim
    )

    mean = pl.pallas_call(
        actor_kernel,
        out_shape=jax.ShapeDtypeStruct((B, act_dim), jnp.float32),
        grid_spec=pltpu.PrefetchScalarGridSpec(
            num_scalar_prefetch=0,
            grid=grid,
            in_specs=[
                # batch-tiled input (last block may be partial; stores masked)
                pl.BlockSpec((tb, obs_dim), lambda i: (i, 0)),
                # weights / biases: same block every step -> VMEM-resident
                pl.BlockSpec((obs_dim, hidden), lambda i: (0, 0)),
                pl.BlockSpec((1, hidden), lambda i: (0, 0)),
                pl.BlockSpec((hidden, hidden), lambda i: (0, 0)),
                pl.BlockSpec((1, hidden), lambda i: (0, 0)),
                pl.BlockSpec((hidden, act_dim), lambda i: (0, 0)),
                pl.BlockSpec((1, act_dim), lambda i: (0, 0)),
            ],
            out_specs=pl.BlockSpec((tb, act_dim), lambda i: (i, 0)),
        ),
        compiler_params=pltpu.CompilerParams(
            # Batch tiles are independent -> shard across TCs on v7x megacore.
            dimension_semantics=("parallel",),
            vmem_limit_bytes=vmem_limit,
        ),
        cost_estimate=pl.CostEstimate(
            flops=flops,
            transcendentals=transcendentals,
            bytes_accessed=bytes_accessed,
        ),
    )(
        x,
        params["w1"], params["b1"],
        params["w2"], params["b2"],
        params["w3"], params["b3"],
    )

    # std does not depend on x: exp (+ optional lazy broadcast) outside the kernel.
    std = jnp.exp(params["log_std"])
    if broadcast_std:
        std = jnp.broadcast_to(std, mean.shape)
    return mean, std


def init_actor_params(key, obs_dim, act_dim, hidden=64):
    """Deterministic synthetic init (PyTorch-like uniform(-1/sqrt(fan_in), ...))."""
    ks = jax.random.split(key, 6)

    def lin(kw, kb, fan_in, fan_out):
        bound = 1.0 / jnp.sqrt(fan_in)
        w = jax.random.uniform(kw, (fan_in, fan_out), jnp.float32, -bound, bound)
        b = jax.random.uniform(kb, (1, fan_out), jnp.float32, -bound, bound)
        return w, b

    w1, b1 = lin(ks[0], ks[1], obs_dim, hidden)
    w2, b2 = lin(ks[2], ks[3], hidden, hidden)
    w3, b3 = lin(ks[4], ks[5], hidden, act_dim)
    log_std = jnp.zeros((1, act_dim), jnp.float32)  # nn.Parameter(torch.zeros(act_dim))
    return dict(w1=w1, b1=b1, w2=w2, b2=b2, w3=w3, b3=b3, log_std=log_std)


def actor_forward_ref(x, p):
    """Plain-JAX reference for correctness check."""
    h = jnp.tanh(x @ p["w1"] + p["b1"])
    h = jnp.tanh(h @ p["w2"] + p["b2"])
    mean = h @ p["w3"] + p["b3"]
    std = jnp.broadcast_to(jnp.exp(p["log_std"]), mean.shape)
    return mean, std


if __name__ == "__main__":
    key = jax.random.PRNGKey(0)
    k_param, k_x, k_x2 = jax.random.split(key, 3)

    B, OBS_DIM, ACT_DIM = 2, 8, 4
    params = init_actor_params(k_param, OBS_DIM, ACT_DIM)

    # Small (module-spec) batch: exercises the B < 8 partial-block path.
    x = jax.random.normal(k_x, (B, OBS_DIM), jnp.float32)
    mean, std = actor_forward(x, params)
    jax.block_until_ready((mean, std))
    mean_ref, std_ref = actor_forward_ref(x, params)
    assert mean.shape == (B, ACT_DIM) and std.shape == (B, ACT_DIM)
    assert jnp.allclose(mean, mean_ref, atol=1e-5, rtol=1e-5)
    assert jnp.allclose(std, std_ref, atol=1e-5, rtol=1e-5)

    # Larger batch: exercises the multi-step grid (>=2 tiles) + masked last block.
    B2 = 1000
    x2 = jax.random.normal(k_x2, (B2, OBS_DIM), jnp.float32)
    mean2, std2 = actor_forward(x2, params)
    jax.block_until_ready((mean2, std2))
    mean2_ref, std2_ref = actor_forward_ref(x2, params)
    assert mean2.shape == (B2, ACT_DIM) and std2.shape == (B2, ACT_DIM)
    assert jnp.allclose(mean2, mean2_ref, atol=1e-5, rtol=1e-5)
    assert jnp.allclose(std2, std2_ref, atol=1e-5, rtol=1e-5)

    # Un-broadcast std path (perf option for downstream consumers).
    mean3, std3 = actor_forward(x2, params, broadcast_std=False)
    jax.block_until_ready((mean3, std3))
    assert std3.shape == (1, ACT_DIM)
    assert jnp.allclose(mean3, mean2_ref, atol=1e-5, rtol=1e-5)

    print("KERNEL_OK")
</pallas_src>

<mosaic_0001>
module attributes {stable_mosaic.version = 11 : i64} {
  func.func @actor_kernel(%arg0: i32, %arg1: memref<8x8xf32, #tpu.memory_space<vmem>>, %arg2: memref<8x64xf32, #tpu.memory_space<vmem>>, %arg3: memref<1x64xf32, #tpu.memory_space<vmem>>, %arg4: memref<64x64xf32, #tpu.memory_space<vmem>>, %arg5: memref<1x64xf32, #tpu.memory_space<vmem>>, %arg6: memref<64x4xf32, #tpu.memory_space<vmem>>, %arg7: memref<1x4xf32, #tpu.memory_space<vmem>>, %arg8: memref<8x4xf32, #tpu.memory_space<vmem>>) attributes {dimension_semantics = [#tpu.dimension_semantics<parallel>], iteration_bounds = array<i64: 1>, scalar_prefetch = 0 : i64, scratch_operands = 0 : i64, tpu.core_type = #tpu.core_type<tc>, window_params = [{transform_indices = @transform_0, window_bounds = array<i64: 8, 8>}, {pipeline_mode = #tpu.pipeline_mode<synchronous>, transform_indices = @transform_1, window_bounds = array<i64: 8, 64>}, {pipeline_mode = #tpu.pipeline_mode<synchronous>, transform_indices = @transform_2, window_bounds = array<i64: 1, 64>}, {pipeline_mode = #tpu.pipeline_mode<synchronous>, transform_indices = @transform_3, window_bounds = array<i64: 64, 64>}, {pipeline_mode = #tpu.pipeline_mode<synchronous>, transform_indices = @transform_4, window_bounds = array<i64: 1, 64>}, {pipeline_mode = #tpu.pipeline_mode<synchronous>, transform_indices = @transform_5, window_bounds = array<i64: 64, 4>}, {pipeline_mode = #tpu.pipeline_mode<synchronous>, transform_indices = @transform_6, window_bounds = array<i64: 1, 4>}, {transform_indices = @transform_7, window_bounds = array<i64: 8, 4>}]} {
    %c0 = arith.constant 0 : index
    %c0_0 = arith.constant 0 : index
    %0 = vector.load %arg1[%c0, %c0_0] : memref<8x8xf32, #tpu.memory_space<vmem>>, vector<8x8xf32>
    %c0_1 = arith.constant 0 : index
    %c0_2 = arith.constant 0 : index
    %1 = vector.load %arg2[%c0_1, %c0_2] : memref<8x64xf32, #tpu.memory_space<vmem>>, vector<8x64xf32>
    %cst = arith.constant dense<0.000000e+00> : vector<8x64xf32>
    %2 = tpu.matmul %0, %1, %cst {dimension_numbers = #tpu.dot_dimension_numbers<[1], [0], [0], [1], [0, 0, 1, 1], [], []>} : vector<8x8xf32>, vector<8x64xf32>, vector<8x64xf32> -> vector<8x64xf32>
    %c0_3 = arith.constant 0 : index
    %c0_4 = arith.constant 0 : index
    %3 = vector.load %arg3[%c0_3, %c0_4] : memref<1x64xf32, #tpu.memory_space<vmem>>, vector<1x64xf32>
    %4 = vector.broadcast %3 : vector<1x64xf32> to vector<8x64xf32>
    %5 = arith.addf %2, %4 : vector<8x64xf32>
    %6 = math.tanh %5 : vector<8x64xf32>
    %c0_5 = arith.constant 0 : index
    %c0_6 = arith.constant 0 : index
    %7 = vector.load %arg4[%c0_5, %c0_6] : memref<64x64xf32, #tpu.memory_space<vmem>>, vector<64x64xf32>
    %cst_7 = arith.constant dense<0.000000e+00> : vector<8x64xf32>
    %8 = tpu.matmul %6, %7, %cst_7 {dimension_numbers = #tpu.dot_dimension_numbers<[1], [0], [0], [1], [0, 0, 1, 1], [], []>} : vector<8x64xf32>, vector<64x64xf32>, vector<8x64xf32> -> vector<8x64xf32>
    %c0_8 = arith.constant 0 : index
    %c0_9 = arith.constant 0 : index
    %9 = vector.load %arg5[%c0_8, %c0_9] : memref<1x64xf32, #tpu.memory_space<vmem>>, vector<1x64xf32>
    %10 = vector.broadcast %9 : vector<1x64xf32> to vector<8x64xf32>
    %11 = arith.addf %8, %10 : vector<8x64xf32>
    %12 = math.tanh %11 : vector<8x64xf32>
    %c0_10 = arith.constant 0 : index
    %c0_11 = arith.constant 0 : index
    %13 = vector.load %arg6[%c0_10, %c0_11] : memref<64x4xf32, #tpu.memory_space<vmem>>, vector<64x4xf32>
    %cst_12 = arith.constant dense<0.000000e+00> : vector<8x4xf32>
    %14 = tpu.matmul %12, %13, %cst_12 {dimension_numbers = #tpu.dot_dimension_numbers<[1], [0], [0], [1], [0, 0, 1, 1], [], []>} : vector<8x64xf32>, vector<64x4xf32>, vector<8x4xf32> -> vector<8x4xf32>
    %c0_13 = arith.constant 0 : index
    %c0_14 = arith.constant 0 : index
    %15 = vector.load %arg7[%c0_13, %c0_14] : memref<1x4xf32, #tpu.memory_space<vmem>>, vector<1x4xf32>
    %16 = vector.broadcast %15 : vector<1x4xf32> to vector<8x4xf32>
    %17 = arith.addf %14, %16 : vector<8x4xf32>
    %c0_15 = arith.constant 0 : index
    %c0_16 = arith.constant 0 : index
    %18 = vector.load %arg8[%c0_15, %c0_16] : memref<8x4xf32, #tpu.memory_space<vmem>>, vector<8x4xf32>
    tpu.vector_store %arg8[%c0_15, %c0_16], %17 {strides = array<i32>} : memref<8x4xf32, #tpu.memory_space<vmem>>, vector<8x4xf32>,
    return
  }
  func.func @transform_0(%arg0: i32) -> (i32, i32) {
    %c0_i32 = arith.constant 0 : i32
    %c0_i32_0 = arith.constant 0 : i32
    return %arg0, %c0_i32 : i32, i32
  }
  func.func @transform_1(%arg0: i32) -> (i32, i32) {
    %c0_i32 = arith.constant 0 : i32
    %c0_i32_0 = arith.constant 0 : i32
    %c0_i32_1 = arith.constant 0 : i32
    return %c0_i32, %c0_i32_0 : i32, i32
  }
  func.func @transform_2(%arg0: i32) -> (i32, i32) {
    %c0_i32 = arith.constant 0 : i32
    %c0_i32_0 = arith.constant 0 : i32
    %c0_i32_1 = arith.constant 0 : i32
    return %c0_i32, %c0_i32_0 : i32, i32
  }
  func.func @transform_3(%arg0: i32) -> (i32, i32) {
    %c0_i32 = arith.constant 0 : i32
    %c0_i32_0 = arith.constant 0 : i32
    %c0_i32_1 = arith.constant 0 : i32
    return %c0_i32, %c0_i32_0 : i32, i32
  }
  func.func @transform_4(%arg0: i32) -> (i32, i32) {
    %c0_i32 = arith.constant 0 : i32
    %c0_i32_0 = arith.constant 0 : i32
    %c0_i32_1 = arith.constant 0 : i32
    return %c0_i32, %c0_i32_0 : i32, i32
  }
  func.func @transform_5(%arg0: i32) -> (i32, i32) {
    %c0_i32 = arith.constant 0 : i32
    %c0_i32_0 = arith.constant 0 : i32
    %c0_i32_1 = arith.constant 0 : i32
    return %c0_i32, %c0_i32_0 : i32, i32
  }
  func.func @transform_6(%arg0: i32) -> (i32, i32) {
    %c0_i32 = arith.constant 0 : i32
    %c0_i32_0 = arith.constant 0 : i32
    %c0_i32_1 = arith.constant 0 : i32
    return %c0_i32, %c0_i32_0 : i32, i32
  }
  func.func @transform_7(%arg0: i32) -> (i32, i32) {
    %c0_i32 = arith.constant 0 : i32
    %c0_i32_0 = arith.constant 0 : i32
    return %arg0, %c0_i32 : i32, i32
  }
}

</mosaic_0001>

<bundles_post_ra>
// kernel: tpu_custom_call.1
= control target key start
LH: loop header
LB: loop body
LE: loop exit
PB: predicated region body
PF: predicated region fallthrough
CT: control target
= control target key end

     0   :  { %12 = vsyncpa [#allocation3], 0  ;;  %s622_s0 = inlined_call_operand.hbm [shape: f32[2,8], index: 0, kind: input, shape index: {}]   ;;  %s623_s1 = inlined_call_operand.vmem [shape: f32[8,64], index: 1, kind: input, shape index: {}]   ;;  %s624_s2 = inlined_call_operand.vmem [shape: f32[1,64], index: 2, kind: input, shape index: {}]   ;;  %s625_s3 = inlined_call_operand.vmem [shape: f32[64,64], index: 3, kind: input, shape index: {}]   ;;  %s626_s4 = inlined_call_operand.hbm [shape: f32[1,64], index: 4, kind: input, shape index: {}]   ;;  %s627_s5 = inlined_call_operand.vmem [shape: f32[64,4], index: 5, kind: input, shape index: {}]   ;;  %s628_s6 = inlined_call_operand.vmem [shape: f32[1,4], index: 6, kind: input, shape index: {}]   ;;  %s629_s7 = inlined_call_operand.hbm [shape: f32[2,4], index: 7, kind: output, shape index: {}]  }
   0x1   :  { %13 = vsyncpa [#allocation6], 0 }
   0x2   :  { %14 = vsyncpa [#allocation4], 0 }
   0x3   :  { %19 = vsyncadd [#allocation3], 96  ;;  %s481_s24 = smov [#allocation2]  }
   0x4   :  { %s20_s25 = sshll.u32 %s481_s24, 4  ;;  %s21_s25 = int_to_ptr.vmem [resolvable:$true] %s20_s25 }
   0x5   :  { %s423_s26 = scalar_lea.vmem %s21_s25, 32  ;;  %s427_s27 = scalar_lea.vmem %s21_s25, 128 }
   0x6   :  { %p424_p0 = scmp.ne.s32.totalorder %s21_s25, %s423_s26  ;;  %p428_p1 = scmp.lt.s32.totalorder %s21_s25, %s21_s25 }
   0x7   :  { %p429_p2 = scmp.lt.s32.totalorder %s427_s27, %s423_s26 }
   0x9   :  { %p430_p3 = por %p429_p2, %p428_p1 }
   0xb   :  { %p431_p4 = pnand %p430_p3, %p424_p0 }
   0xd   :  { %434 = shalt.err (!%p431_p4)
}
   0xe   :  { %s482_s28 = smov 32   ;;  %s483_s29 = smov 2  }
   0xf   :  { %26 = dma.hbm_to_vmem [thread:$0]  %s622_s0, 32, %s21_s25, [#allocation3], %s482_s28, %s482_s28, %s483_s29  }
  0x10   :  { %s484_s9 = smov [#allocation5]  }
  0x11   :  { %s39_s10 = sshll.u32 %s484_s9, 4  ;;  %s40_s10 = int_to_ptr.vmem [resolvable:$true] %s39_s10 }
  0x12   :  { %s443_s11 = scalar_lea.vmem %s40_s10, 16  ;;  %s447_s12 = scalar_lea.vmem %s40_s10, 32 }
  0x13   :  { %p444_p5 = scmp.ne.s32.totalorder %s40_s10, %s443_s11  ;;  %p448_p6 = scmp.lt.s32.totalorder %s40_s10, %s40_s10 }
  0x14   :  { %p449_p7 = scmp.lt.s32.totalorder %s447_s12, %s443_s11 }
  0x16   :  { %p450_p8 = por %p449_p7, %p448_p6 }
  0x18   :  { %p451_p9 = pnand %p450_p8, %p444_p5 }
  0x1a   :  { %454 = shalt.err (!%p451_p9)
}
  0x1b   :  { %42 = dma.hbm_to_vmem [thread:$0]  %s626_s4, 16, %s40_s10, [#allocation6]  }
  0x1c   :  { %475 = dma.done.wait [#allocation3], 128  }
  0x1d   :  { %476 = vsyncadd [#allocation3], 4294967168 }
  0x1e   :  { %477 = dma.done.wait [#allocation6], 16  }
  0x1f   :  { %478 = vsyncadd [#allocation6], 4294967280  ;;  %v485_v0 = vmov 0.0   ;;  %vm486_vm0 = vmmov 0   ;;  %vm62_vm1 = vcmask 64512   ;;  %v54_v1 = vld [vmem:[%s623_s1] sm:$0xff] }
  0x20   :  { %361 = vmatprep.subr.mxu0 %v485_v0  ;;  %363 = vmatprep.mubr.msk.f32.mxu0 %vm486_vm0, %v485_v0  ;;  %v53_v2 = vld [vmem:[#allocation2] sm:$0xff]  ;;  %v144_v3 = vld [vmem:[%s625_s3 + $0x38] sm:$0xff]  ;;  %v143_v4 = vld [vmem:[%s625_s3 + $0x30] sm:$0xff]  ;;  %vm152_vm2 = vcmask 523264   ;;  %vm315_vm3 = vcmask 31744  }
  0x21   :  { %366 = vmatprep.subr.mxu1 %v485_v0  ;;  %382 = vmatprep.mubr.msk.f32.mxu1 %vm486_vm0, %v485_v0  ;;  %v142_v5 = vld [vmem:[%s625_s3 + $0x28] sm:$0xff]  ;;  %v141_v6 = vld [vmem:[%s625_s3 + $0x20] sm:$0xff]  ;;  %v140_v7 = vld [vmem:[%s625_s3 + $0x18] sm:$0xff] }
  0x22   :  { %362 = vmatpush3.msra.mxu0 %v54_v1  ;;  %367 = vmatpush3.msra.mxu1 %v144_v3  ;;  %v139_v8 = vld [vmem:[%s625_s3 + $0x10] sm:$0xff]  ;;  %v138_v9 = vld [vmem:[%s625_s3 + $0x8] sm:$0xff]  ;;  %v137_v10 = vld [vmem:[%s625_s3] sm:$0xff] }
  0x23   :  { %364 = vmatmul.mubr.msk.f32.vlgmr.msra.gmra.mxu0 %vm62_vm1, %v53_v2  ;;  %385 = vmatprep.subr.mxu0 %v485_v0  ;;  %v335_v11 = vld [vmem:[%s624_s2] ss:$0 sm:$0xff]  ;;  %v234_v16 = vld [vmem:[%s627_s5 + $0x38] sm:$0xff]  ;;  %v233_v17 = vld [vmem:[%s627_s5 + $0x30] sm:$0xff] }
  0x24   :  { %401 = vmatprep.mubr.msk.f32.mxu0 %vm486_vm0, %v485_v0  ;;  %368 = vmatprep.subr.mxu1 %v485_v0  ;;  %v232_v18 = vld [vmem:[%s627_s5 + $0x28] sm:$0xff]  ;;  %v231_v19 = vld [vmem:[%s627_s5 + $0x20] sm:$0xff]  ;;  %v230_v20 = vld [vmem:[%s627_s5 + $0x18] sm:$0xff] }
  0x25   :  { %369 = vmatpush3.msra.mxu1 %v143_v4  ;;  %386 = vmatpush3.msra.mxu0 %v234_v16  ;;  %v229_v21 = vld [vmem:[%s627_s5 + $0x10] sm:$0xff]  ;;  %v228_v22 = vld [vmem:[%s627_s5 + $0x8] sm:$0xff]  ;;  %v227_v23 = vld [vmem:[%s627_s5] sm:$0xff] }
  0x26   :  { %370 = vmatprep.subr.mxu1 %v485_v0  ;;  %387 = vmatprep.subr.mxu0 %v485_v0  ;;  %v337_v24 = vld [vmem:[#allocation5] ss:$0 sm:$0xff]  ;;  %v339_v29 = vld [vmem:[%s628_s6] ss:$0 sm:$0xff] }
  0x27   :  { %371 = vmatpush3.msra.mxu1 %v142_v5  ;;  %388 = vmatpush3.msra.mxu0 %v233_v17 }
  0x28   :  { %372 = vmatprep.subr.mxu1 %v485_v0  ;;  %389 = vmatprep.subr.mxu0 %v485_v0 }
  0x29   :  { %373 = vmatpush3.msra.mxu1 %v141_v6  ;;  %390 = vmatpush3.msra.mxu0 %v232_v18 }
  0x2a   :  { %374 = vmatprep.subr.mxu1 %v485_v0  ;;  %391 = vmatprep.subr.mxu0 %v485_v0 }
  0x2b   :  { %375 = vmatpush3.msra.mxu1 %v140_v7  ;;  %392 = vmatpush3.msra.mxu0 %v231_v19 }
  0x2c   :  { %376 = vmatprep.subr.mxu1 %v485_v0  ;;  %393 = vmatprep.subr.mxu0 %v485_v0 }
  0x2d   :  { %377 = vmatpush3.msra.mxu1 %v139_v8  ;;  %394 = vmatpush3.msra.mxu0 %v230_v20 }
  0x2e   :  { %378 = vmatprep.subr.mxu1 %v485_v0  ;;  %395 = vmatprep.subr.mxu0 %v485_v0 }
  0x2f   :  { %379 = vmatpush3.msra.mxu1 %v138_v9  ;;  %396 = vmatpush3.msra.mxu0 %v229_v21 }
  0x30   :  { %380 = vmatprep.subr.mxu1 %v485_v0  ;;  %397 = vmatprep.subr.mxu0 %v485_v0 }
  0x31   :  { %381 = vmatpush3.msra.mxu1 %v137_v10  ;;  %398 = vmatpush3.msra.mxu0 %v228_v22 }
  0x32   :  { %399 = vmatprep.subr.mxu0 %v485_v0 }
  0x33   :  { %400 = vmatpush3.msra.mxu0 %v227_v23 }
  0xe3   :  { %v132_v12 = vpop.f32.mrf.mxu0 }
  0xe4   :  { %v133_v13 = vadd.f32 %v335_v11, %v132_v12 }
  0xe5   :  { %v365_v14 = vpop.f32.mrf.mxu0 }
  0xe6   :  { %411 = vtanh.f32 %v133_v13 }
  0xf3   :  { %v412_v15 = vpop.eup %411 }
  0xf4   :  { %383 = vmatmul.mubr.msk.f32.vlgmr.msra.gmra.mxu1 %vm152_vm2, %v412_v15 }
 0x1b4   :  { %v222_v25 = vpop.f32.mrf.mxu1 }
 0x1b5   :  { %v223_v26 = vadd.f32 %v337_v24, %v222_v25 }
 0x1b6   :  { %v384_v27 = vpop.f32.mrf.mxu1 }
 0x1b7   :  { %413 = vtanh.f32 %v223_v26 }
 0x1c4   :  { %v414_v28 = vpop.eup %413 }
 0x1c5   :  { %402 = vmatmul.mubr.msk.f32.vlgmr.msra.gmra.mxu0 %vm152_vm2, %v414_v28 }
 0x285   :  { %v311_v30 = vpop.f32.mrf.mxu0 }
 0x286   :  { %v312_v31 = vadd.f32 %v339_v29, %v311_v30 }
 0x287   :  { %v403_v32 = vpop.f32.mrf.mxu0 }
 0x288   :  { %316 = vst.msk [vmem:[#allocation7] sm:$0xff] %vm315_vm3, %v312_v31 }
 0x289   :  { %321 = vsyncadd [#allocation4], 96  ;;  %s487_s5 = smov [#allocation7]  }
 0x28a   :  { %s322_s24 = sshll.u32 %s487_s5, 4  ;;  %s323_s24 = int_to_ptr.vmem [resolvable:$true] %s322_s24 }
 0x28b   :  { %s455_s25 = scalar_lea.vmem %s323_s24, 32  ;;  %s459_s26 = scalar_lea.vmem %s323_s24, 128 }
 0x28c   :  { %p456_p10 = scmp.ne.s32.totalorder %s323_s24, %s455_s25  ;;  %p460_p11 = scmp.lt.s32.totalorder %s323_s24, %s323_s24 }
 0x28d   :  { %p461_p12 = scmp.lt.s32.totalorder %s459_s26, %s455_s25 }
 0x28f   :  { %p462_p13 = por %p461_p12, %p460_p11 }
 0x291   :  { %p463_p0 = pnand %p462_p13, %p456_p10 }
 0x293   :  { %466 = shalt.err (!%p463_p0)
}
 0x294   :  { %328 = dma.vmem_to_hbm [thread:$0]  %s323_s24, 32, %s629_s7, [#allocation4], %s482_s28, %s482_s28, %s483_s29  }
 0x295   :  { %479 = dma.done.wait [#allocation4], 128  }
 0x296   :  { %480 = vsyncadd [#allocation4], 4294967168 }
 0x297   :  { %332 = vsyncpa [#allocation3], 1 }
 0x298   :  { %333 = vsyncpa [#allocation6], 1 }
 0x299   :  { %334 = vsyncpa [#allocation4], 1 }

</bundles_post_ra>
